<compile_context>
chip_gen: v7x
topology: tpu7x:2x2x1
jax: 0.10.0
libtpu: 0.0.40
codegen_flags: <defaults>
</compile_context>

<pallas_src>
import jax
import jax.numpy as jnp
from jax.experimental import pallas as pl
from jax.experimental.pallas import tpu as pltpu


def planar_kernel(z_ref, u_ref, w_ref, b_ref, fz_ref, ld_ref):
    """One batch tile: fz = z + u*tanh(w.z + b); ld = log|1 + (1-t^2)*(w.u)|."""
    z = z_ref[...]                                            # (tb, Z) f32
    u = u_ref[...]                                            # (tb, Z)
    w = w_ref[...]                                            # (tb, Z)
    b = b_ref[...]                                            # (tb, 1)

    # w^T z + b  (row-wise reduce on the XLU), tanh on the EUP.
    prod = jnp.sum(w * z, axis=-1, keepdims=True) + b         # (tb, 1)
    t = jnp.tanh(prod)

    # f_z = z + u * tanh(prod)
    fz_ref[...] = z + u * t                                   # (tb, Z)

    # psi @ u = (1 - t^2) * (w . u)
    wu = jnp.sum(w * u, axis=-1, keepdims=True)               # (tb, 1)
    psi_u = (1.0 - t * t) * wu
    ld_ref[...] = jnp.log(jnp.abs(1.0 + psi_u))               # (tb, 1)


def _vmem_capacity_bytes():
    """Physical VMEM per core: 64 MiB on v7x, 128 MiB on v5e/v6e."""
    try:
        cap = int(pltpu.get_tpu_info().vmem_capacity_bytes)
        if cap > 0:
            return cap
    except Exception:
        pass
    try:
        kind = jax.devices()[0].device_kind.lower()
        if "v7" in kind:
            return 64 * 1024 * 1024
    except Exception:
        pass
    return 128 * 1024 * 1024


def _choose_tb(B, Z, vmem_cap_bytes):
    """Pick the batch tile.

    Constraints:
      * tb divides B and tb % 8 == 0 (or tb == B as the full-extent fallback),
      * one (tb, Z) f32 block stays <= 4 MiB (mem-bound kernel: >= ~1 MiB
        blocks reach ~85% of the HBM roofline),
      * all double-buffered blocks (z, u, w, f_z rows + lane-padded b, ld
        columns) fit in ~75% of VMEM (generation-aware: 64 MiB on v7x),
      * >= 2 grid programs whenever B >= 16 (v7x megacore sharding).
    """
    row_block_bytes = Z * 4
    # 4 MiB cap on a single (tb, Z) input block.
    tb_cap = (4 * 1024 * 1024) // row_block_bytes
    # Total pipelined VMEM per batch row: 2 buffers * (4 row arrays * Z*4 B
    # + 2 lane-padded (.,1) columns at 128*4 B each).
    per_row_pipelined = 2 * (4 * Z * 4 + 2 * 128 * 4)
    tb_cap = min(tb_cap, (3 * vmem_cap_bytes // 4) // per_row_pipelined)
    if B >= 16:
        tb_cap = min(tb_cap, B // 2)          # keep >= 2 grid programs
    tb_cap = max(8, min(tb_cap, B))

    best = 0
    t = 8
    while t <= tb_cap:
        if B % t == 0:
            best = t
        t += 8
    if best == 0:
        best = B   # small / awkward B: single full-extent block (always legal)
    return best


def planar_pallas(z2, u2, w2, b2, *, tb=None):
    """z2,u2,w2: (B, Z) f32; b2: (B, 1) f32 -> (f_z (B, Z), log_det (B, 1))."""
    B, Z = z2.shape
    vmem_cap = _vmem_capacity_bytes()
    if tb is None:
        tb = _choose_tb(B, Z, vmem_cap)
    assert B % tb == 0, (B, tb)
    grid = (B // tb,)

    row_spec = pl.BlockSpec((tb, Z), lambda i: (i, 0))
    col_spec = pl.BlockSpec((tb, 1), lambda i: (i, 0))

    # HBM traffic with z aliased into f_z: read z, u, w; write f_z in place;
    # plus the tiny b / log_det columns.
    cost = pl.CostEstimate(
        flops=8 * B * Z,                 # two row-dots + the f_z update
        transcendentals=2 * B,           # tanh + log per row
        bytes_accessed=4 * (3 * B * Z + 2 * B),
    )

    # Scoped-VMEM limit sized to the actual double-buffered block budget.
    pipelined_bytes = 2 * (4 * tb * Z * 4 + 2 * tb * 128 * 4)
    vmem_limit = int(min(3 * vmem_cap // 4,
                         max(32 * 1024 * 1024,
                             pipelined_bytes + (8 * 1024 * 1024))))

    return pl.pallas_call(
        planar_kernel,
        out_shape=(jax.ShapeDtypeStruct((B, Z), jnp.float32),
                   jax.ShapeDtypeStruct((B, 1), jnp.float32)),
        grid_spec=pltpu.PrefetchScalarGridSpec(
            num_scalar_prefetch=0,
            grid=grid,
            in_specs=[row_spec,    # z
                      row_spec,    # u
                      row_spec,    # w
                      col_spec],   # b
            out_specs=(row_spec,   # f_z
                       col_spec),  # log_det
        ),
        input_output_aliases={0: 0},      # f_z reuses z's HBM buffer (z donated)
        compiler_params=pltpu.CompilerParams(
            dimension_semantics=("parallel",),
            vmem_limit_bytes=vmem_limit),
        cost_estimate=cost,
    )(z2, u2, w2, b2)


def planar_forward(z, u, w, b, *, tb=None):
    """Matches Planar.forward: z (B,Z), u (B,Z,1), w (B,1,Z), b (B,1,1)."""
    B, Z = z.shape
    u2 = u.reshape(B, Z)
    w2 = w.reshape(B, Z)
    b2 = b.reshape(B, 1)
    f_z, log_det = planar_pallas(z, u2, w2, b2, tb=tb)
    return f_z, log_det.reshape(B)


def reference_forward(z, u, w, b):
    """Plain-JAX reference mirroring the PyTorch module."""
    zc = z[:, :, None]                                        # (B, Z, 1)
    prod = jnp.matmul(w, zc) + b                              # (B, 1, 1)
    t = jnp.tanh(prod)
    f_z = (zc + u * t)[:, :, 0]                               # (B, Z)
    psi = w * (1.0 - t ** 2)                                  # (B, 1, Z)
    log_det = jnp.log(jnp.abs(1.0 + jnp.matmul(psi, u)))[:, 0, 0]
    return f_z, log_det


if __name__ == "__main__":
    B, Z = 16, 64

    key = jax.random.PRNGKey(0)
    kz, ku, kw, kb = jax.random.split(key, 4)
    z = jax.random.normal(kz, (B, Z), jnp.float32)
    # Keep w, u, b modest so 1 + psi@u stays well away from 0 (log well-conditioned).
    u = 0.1 * jax.random.normal(ku, (B, Z, 1), jnp.float32)
    w = 0.1 * jax.random.normal(kw, (B, 1, Z), jnp.float32)
    b = 0.1 * jax.random.normal(kb, (B, 1, 1), jnp.float32)

    # Reference BEFORE the kernel: z is donated into the kernel call below.
    f_ref, ld_ref = reference_forward(z, u, w, b)
    f_ref, ld_ref = jax.block_until_ready((f_ref, ld_ref))

    fwd = jax.jit(planar_forward, donate_argnums=0)   # lets f_z alias z's buffer
    f_z, log_det = fwd(z, u, w, b)
    f_z, log_det = jax.block_until_ready((f_z, log_det))

    assert f_z.shape == (B, Z)
    assert log_det.shape == (B,)
    assert jnp.allclose(f_z, f_ref, atol=1e-5, rtol=1e-5)
    assert jnp.allclose(log_det, ld_ref, atol=1e-5, rtol=1e-5)

    print("KERNEL_OK")
</pallas_src>

<mosaic_0001>
module attributes {stable_mosaic.version = 11 : i64} {
  func.func @planar_kernel(%arg0: i32, %arg1: memref<8x64xf32, #tpu.memory_space<vmem>>, %arg2: memref<8x64xf32, #tpu.memory_space<vmem>>, %arg3: memref<8x64xf32, #tpu.memory_space<vmem>>, %arg4: memref<8x1xf32, #tpu.memory_space<vmem>>, %arg5: memref<8x64xf32, #tpu.memory_space<vmem>>, %arg6: memref<8x1xf32, #tpu.memory_space<vmem>>) attributes {dimension_semantics = [#tpu.dimension_semantics<parallel>], iteration_bounds = array<i64: 2>, scalar_prefetch = 0 : i64, scratch_operands = 0 : i64, tpu.core_type = #tpu.core_type<tc>, window_params = [{transform_indices = @transform_0, window_bounds = array<i64: 8, 64>}, {transform_indices = @transform_1, window_bounds = array<i64: 8, 64>}, {transform_indices = @transform_2, window_bounds = array<i64: 8, 64>}, {transform_indices = @transform_3, window_bounds = array<i64: 8, 1>}, {transform_indices = @transform_4, window_bounds = array<i64: 8, 64>}, {transform_indices = @transform_5, window_bounds = array<i64: 8, 1>}]} {
    %c0 = arith.constant 0 : index
    %c0_0 = arith.constant 0 : index
    %0 = vector.load %arg1[%c0, %c0_0] : memref<8x64xf32, #tpu.memory_space<vmem>>, vector<8x64xf32>
    %c0_1 = arith.constant 0 : index
    %c0_2 = arith.constant 0 : index
    %1 = vector.load %arg2[%c0_1, %c0_2] : memref<8x64xf32, #tpu.memory_space<vmem>>, vector<8x64xf32>
    %c0_3 = arith.constant 0 : index
    %c0_4 = arith.constant 0 : index
    %2 = vector.load %arg3[%c0_3, %c0_4] : memref<8x64xf32, #tpu.memory_space<vmem>>, vector<8x64xf32>
    %c0_5 = arith.constant 0 : index
    %c0_6 = arith.constant 0 : index
    %3 = vector.load %arg4[%c0_5, %c0_6] : memref<8x1xf32, #tpu.memory_space<vmem>>, vector<8x1xf32>
    %4 = arith.mulf %2, %0 : vector<8x64xf32>
    %cst = arith.constant dense<0.000000e+00> : vector<8xf32>
    %5 = vector.multi_reduction <add>, %4, %cst [1] : vector<8x64xf32> to vector<8xf32>
    %6 = vector.shape_cast %5 : vector<8xf32> to vector<8x1xf32>
    %7 = arith.addf %6, %3 : vector<8x1xf32>
    %8 = math.tanh %7 : vector<8x1xf32>
    %9 = vector.broadcast %8 : vector<8x1xf32> to vector<8x64xf32>
    %10 = arith.mulf %1, %9 : vector<8x64xf32>
    %11 = arith.addf %0, %10 : vector<8x64xf32>
    %c0_7 = arith.constant 0 : index
    %c0_8 = arith.constant 0 : index
    %12 = vector.load %arg5[%c0_7, %c0_8] : memref<8x64xf32, #tpu.memory_space<vmem>>, vector<8x64xf32>
    tpu.vector_store %arg5[%c0_7, %c0_8], %11 {strides = array<i32>} : memref<8x64xf32, #tpu.memory_space<vmem>>, vector<8x64xf32>,
    %13 = arith.mulf %2, %1 : vector<8x64xf32>
    %cst_9 = arith.constant dense<0.000000e+00> : vector<8xf32>
    %14 = vector.multi_reduction <add>, %13, %cst_9 [1] : vector<8x64xf32> to vector<8xf32>
    %15 = vector.shape_cast %14 : vector<8xf32> to vector<8x1xf32>
    %16 = arith.mulf %8, %8 : vector<8x1xf32>
    %cst_10 = arith.constant 1.000000e+00 : f32
    %17 = vector.broadcast %cst_10 : f32 to vector<8x1xf32>
    %18 = arith.subf %17, %16 : vector<8x1xf32>
    %19 = arith.mulf %18, %15 : vector<8x1xf32>
    %cst_11 = arith.constant 1.000000e+00 : f32
    %20 = vector.broadcast %cst_11 : f32 to vector<8x1xf32>
    %21 = arith.addf %20, %19 : vector<8x1xf32>
    %22 = math.absf %21 : vector<8x1xf32>
    %23 = math.log %22 : vector<8x1xf32>
    %c0_12 = arith.constant 0 : index
    %c0_13 = arith.constant 0 : index
    %24 = vector.load %arg6[%c0_12, %c0_13] : memref<8x1xf32, #tpu.memory_space<vmem>>, vector<8x1xf32>
    tpu.vector_store %arg6[%c0_12, %c0_13], %23 {strides = array<i32>} : memref<8x1xf32, #tpu.memory_space<vmem>>, vector<8x1xf32>,
    return
  }
  func.func @transform_0(%arg0: i32) -> (i32, i32) {
    %c0_i32 = arith.constant 0 : i32
    %c0_i32_0 = arith.constant 0 : i32
    return %arg0, %c0_i32 : i32, i32
  }
  func.func @transform_1(%arg0: i32) -> (i32, i32) {
    %c0_i32 = arith.constant 0 : i32
    %c0_i32_0 = arith.constant 0 : i32
    return %arg0, %c0_i32 : i32, i32
  }
  func.func @transform_2(%arg0: i32) -> (i32, i32) {
    %c0_i32 = arith.constant 0 : i32
    %c0_i32_0 = arith.constant 0 : i32
    return %arg0, %c0_i32 : i32, i32
  }
  func.func @transform_3(%arg0: i32) -> (i32, i32) {
    %c0_i32 = arith.constant 0 : i32
    %c0_i32_0 = arith.constant 0 : i32
    return %arg0, %c0_i32 : i32, i32
  }
  func.func @transform_4(%arg0: i32) -> (i32, i32) {
    %c0_i32 = arith.constant 0 : i32
    %c0_i32_0 = arith.constant 0 : i32
    return %arg0, %c0_i32 : i32, i32
  }
  func.func @transform_5(%arg0: i32) -> (i32, i32) {
    %c0_i32 = arith.constant 0 : i32
    %c0_i32_0 = arith.constant 0 : i32
    return %arg0, %c0_i32 : i32, i32
  }
}

</mosaic_0001>

<bundles_post_ra>
// kernel: planar_forward.1
= control target key start
LH: loop header
LB: loop body
LE: loop exit
PB: predicated region body
PF: predicated region fallthrough
CT: control target
= control target key end

     0   :  { %11 = vsyncpa [#allocation3], 0  ;;  %s873_s0 = inlined_call_operand.hbm [shape: f32[16,64], index: 0, kind: input, shape index: {}, may-alias: {0,4}]   ;;  %s874_s1 = inlined_call_operand.vmem [shape: f32[16,64], index: 1, kind: input, shape index: {}]   ;;  %s875_s2 = inlined_call_operand.vmem [shape: f32[16,64], index: 2, kind: input, shape index: {}]   ;;  %s876_s3 = inlined_call_operand.vmem [shape: f32[16,1], index: 3, kind: input, shape index: {}]   ;;  %s877_s4 = inlined_call_operand.hbm [shape: f32[16,64], index: 4, kind: output, shape index: {0}, may-alias: {0,4}]   ;;  %s878_s5 = inlined_call_operand.vmem [shape: f32[16,1], index: 5, kind: output, shape index: {1}]  }
   0x1   :  { %13 = vsyncpa [#allocation3 + $0x1], 0 }
   0x2   :  { %14 = vsyncpa [#allocation4], 0 }
   0x3   :  { %16 = vsyncpa [#allocation4 + $0x1], 0  ;;  %s685_s18 = smov 0   ;;  %s687_s19 = smov 0  }
   0x4   :  { %s689_s20 = smov 0   ;;  %s691_s21 = smov 0  }
   0x5 LB: > { %s706_s22 = sadd.s32 4294967295, %s650_s21   ;;  %s485_s23 = sadd.s32 4294967294, %s650_s21   ;;  %s650_s21 = sphi %s691_s21, %s893_s21   ;;  %s646_s20 = sphi %s689_s20, %s892_s20   ;;  %s642_s19 = sphi %s687_s19, %s891_s19   ;;  %s638_s18 = sphi %s685_s18, %s890_s18  }
   0x6   : > { %s710_s24 = sadd.s32 1, %s650_s21   ;;  %s29_s25 = sadd.s32 1, %s646_s20 }
   0x7   : > { %s26_s26 = ssub.s32 %s650_s21, %s710_s24  ;;  %p36_p0 = scmp.ne.s32.totalorder %s646_s20, %s642_s19 }
   0x8   : > { %p27_p1 = scmp.eq.s32.totalorder %s26_s26, 0  ;;  %p37_p2 = scmp.eq.s32.totalorder %s650_s21, 0 }
   0x9   : > { %p42_p3 = scmp.ne.s32.totalorder %s642_s19, %s638_s18  ;;  %p43_p4 = scmp.eq.s32.totalorder %s706_s22, 0 }
   0xa   : > { %s722_s27 = scalar_select %p27_p1, %s646_s20, %s29_s25  }
   0xb   : > { %p724_p5 = por %p37_p2, %p36_p0  ;;  %p728_p6 = por %p43_p4, %p42_p3 }
   0xc   : > { %p144_p7 = scmp.eq.s32.totalorder %s706_s22, 1  ;;  %p150_p8 = scmp.eq.s32.totalorder %s485_s23, 1 }
   0xd   : > { %p513_p10 = scmp.lt.s32.totalorder %s650_s21, 2  ;;  %s196_s7 = sand.u32 1, %s646_s20  }
   0xe   : > { %p735_p11 = por %p144_p7, %p36_p0  ;;  %p739_p12 = por %p150_p8, %p42_p3 }
   0xf   : > { %s489_s8 = sshll.u32 %s650_s21, 7  ;;  %s488_s9 = sshll.u32 %s196_s7, 3 }
  0x10   : > { %s882_s30 = scalar_select %p735_p11, 1, 0 }
  0x11   : > { %s883_s6 = scalar_select %p739_p12, 1, 0 }
  0x12   : > { %s748_s12 = scalar_lea.hbm %s873_s0, %s489_s8  ;;  %s200_s13 = scalar_lea.vmem [#allocation2], %s488_s9 }
  0x13   : > { %s207_s14 = sshll.u32 %s200_s13, 4  ;;  %p752_p13 = pnand %p513_p10, %p724_p5  ;;  %s756_s14 = int_to_ptr.vmem [resolvable:$true] %s207_s14 }
  0x14   : > { %s197_s16 = scalar_lea.sflag [#allocation3], %s196_s7  ;;  %s554_s17 = scalar_lea.hbm %s748_s12, 128 }
  0x15   : > { %p555_p2 = scmp.ne.s32.totalorder %s748_s12, %s554_s17  ;;  %p556_p3 = pneg %p752_p13 }
  0x16   : > { %s559_s26 = scalar_lea.hbm %s873_s0, 256  ;;  %p560_p5 = scmp.lt.u32.totalorder %s748_s12, %s873_s0 }
  0x17   : > { %p557_p4 = pnand %p556_p3, %p555_p2  ;;  %p561_p8 = scmp.lt.u32.totalorder %s559_s26, %s554_s17 }
  0x18   : > { %p563_p9 = scmp.lt.u32.totalorder %s554_s17, %s748_s12 }
  0x19   : > { %p558_p7 = pneg %p557_p4  ;;  %p562_p10 = por %p561_p8, %p560_p5 }
  0x1b   : > { %p564_p0 = por %p563_p9, %p562_p10 }
  0x1d   : > { %p565_p1 = pnand %p564_p0, %p558_p7 }
  0x1f   : > { %568 = shalt.err (!%p565_p1)
}
  0x20   : > { %s569_s7 = scalar_lea.vmem %s756_s14, 128  ;;  %s652_s9 = smov [#allocation2]  }
  0x21   : > { %p570_p2 = scmp.ne.s32.totalorder %s756_s14, %s569_s7  ;;  %s574_s10 = sshll.u32 %s652_s9, 4  ;;  %s575_s10 = int_to_ptr.vmem [resolvable:$false] %s574_s10 }
  0x22   : > { %s576_s11 = scalar_lea.vmem %s575_s10, 256  ;;  %p577_p11 = scmp.lt.s32.totalorder %s756_s14, %s575_s10 }
  0x23   : > { %p572_p4 = pnand %p570_p2, %p556_p3  ;;  %p578_p5 = scmp.lt.s32.totalorder %s576_s11, %s569_s7 }
  0x25   : > { %p573_p12 = pneg %p572_p4  ;;  %p579_p8 = por %p578_p5, %p577_p11 }
  0x27   : > { %p580_p9 = pnand %p579_p8, %p573_p12 }
  0x29   : > { %583 = shalt.err (!%p580_p9)
}
  0x2a   : > { %508 = dma.hbm_to_vmem [thread:$0]  (!%p752_p13), %s748_s12, 128, %s756_s14, %s197_s16  }
  0x2b   : > { %p885_p0 = scmp.lt.s32.totalorder %s650_s21, 3  ;;  %p886_p1 = scmp.ge.s32.totalorder %s650_s21, 1 }
  0x2d   : > { %p234_p3 = pnand %p886_p1, %p885_p0 }
  0x2e   : > { %s790_s13 = sand.u32 (!%p234_p3), 1, %s642_s19  }
  0x2f   : > { %237 = sbr.rel (%p234_p3) target bundleno = 366 (0x16e), region = 36  ;;  %s491_s17 = sshll.u32 (!%p234_p3), %s790_s13, 3 }
  0x30   : > { %s240_s23 = scalar_lea.sflag (!%p234_p3), [#allocation3], %s790_s13  ;;  %s243_s15 = scalar_lea.vmem (!%p234_p3), [#allocation2], %s491_s17 }
  0x36   : > { %629 = dma.done.wait (%p728_p6), %s240_s23, 128  }
  0x37   : > { %631 = vsyncadd (%p728_p6), %s240_s23, 4294967168  ;;  %p286_p11 = scmp.lt.s32.totalorder %s706_s22, 1  ;;  %v302_v0 = vld [vmem:[%s243_s15] sm:$0xff]  ;;  %vm307_vm0 = vcmask 523264   ;;  %v653_v7 = vmov 0   ;;  %vm332_vm1 = vcmask 7168  }
  0x38   : > { %548 = vset.pattern.permute.xlu1 %v653_v7  ;;  %549 = vset.pattern.permute.xlu0 %v653_v7  ;;  %s279_s16 = scalar_lea.vmem [#allocation5], %s491_s17  ;;  %p887_p12 = scmp.ne.s32.totalorder %s882_s30, 0 }
  0x39   : > { %s287_s12 = scalar_select %p286_p11, %s706_s22, 1 }
  0x3a   : > { %s352_s25 = sshll.u32 %s279_s16, 4  ;;  %s830_s25 = int_to_ptr.vmem [resolvable:$true] %s352_s25 }
  0x3b   : > { %s802_s14 = sshll.u32 %s287_s12, 3  ;;  %s498_s12 = sshll.u32 %s706_s22, 7 }
  0x3c   : > { %s293_s26 = scalar_lea.vmem %s875_s2, %s802_s14  ;;  %s289_s7 = scalar_lea.vmem %s874_s1, %s802_s14 }
  0x3d   : > { %v304_v1 = vld [vmem:[%s293_s26] sm:$0xff]  ;;  %s297_s10 = scalar_lea.vmem %s876_s3, %s802_s14  ;;  %s301_s15 = scalar_lea.vmem %s878_s5, %s802_s14 }
  0x3e   : > { %v303_v2 = vld [vmem:[%s289_s7] sm:$0xff]  ;;  %v306_v3 = vmul.f32 %v304_v1, %v302_v0  ;;  %s828_s8 = scalar_lea.hbm %s877_s4, %s498_s12  ;;  %s335_s14 = scalar_lea.sflag [#allocation4], %s790_s13 }
  0x3f   : > { %v321_v4 = vmul.f32 %v304_v1, %v303_v2  ;;  %v305_v8 = vld [vmem:[%s297_s10] sm:$0xff]  ;;  %s584_s7 = scalar_lea.vmem %s830_s25, 128  ;;  %s654_s22 = smov [#allocation5]  }
  0x40   : > { %v308_v5 = vsel %vm307_vm0, %v306_v3, 0.0  ;;  %p585_p6 = scmp.ne.s32.totalorder %s830_s25, %s584_s7  ;;  %s588_s17 = sshll.u32 %s654_s22, 4  ;;  %s589_s17 = int_to_ptr.vmem [resolvable:$false] %s588_s17 }
  0x41   : > { %309 = vadd.xlane.f32.xlu0 %v308_v5  ;;  %v322_v6 = vsel %vm307_vm0, %v321_v4, 0.0  ;;  %s590_s29 = scalar_lea.vmem %s589_s17, 256  ;;  %p591_p10 = scmp.lt.s32.totalorder %s830_s25, %s589_s17 }
  0x42   : > { %p586_p13 = pnand %p585_p6, %p887_p12  ;;  %p592_p2 = scmp.lt.s32.totalorder %s590_s29, %s584_s7 }
  0x44   : > { %p587_p7 = pneg %p586_p13  ;;  %p593_p4 = por %p592_p2, %p591_p10 }
  0x45   : > { %323 = vadd.xlane.f32.xlu0 %v322_v6 }
  0x46   : > { %p594_p5 = pnand %p593_p4, %p587_p7 }
  0xce   : > { %v310_v9 = vpop.xlane.xlu0 %309 }
  0xcf   : > { %v311_v10 = vadd.f32 %v310_v9, %v305_v8 }
  0xd1   : > { %550 = vtanh.f32 %v311_v10 }
  0xd2   : > { %v324_v13 = vpop.xlane.xlu0 %323 }
  0xdb   : > { %v551_v11 = vpop.eup %550 }
  0xdc   : > { %315 = vperm.xlu1 %548, %v551_v11   ;;  %v325_v12 = vmul.f32 %v551_v11, %v551_v11 }
  0xde   : > { %v326_v14 = vsub.f32 1.0, %v325_v12 }
  0xe0   : > { %v327_v15 = vmul.f32 %v326_v14, %v324_v13 }
  0xe2   : > { %v328_v16 = vadd.f32 1.0, %v327_v15 }
  0xe4   : > { %v329_v17 = vand.u32 2147483647, %v328_v16 }
  0xe6   : > { %552 = vlog2.f32 %v329_v17 }
  0xf0   : > { %v553_v18 = vpop.eup %552 }
  0xf1   : > { %v331_v19 = vmul.f32 0.6931472, %v553_v18 }
  0xf3   : > { %333 = vst.msk [vmem:[%s301_s15] sm:$0xff] %vm332_vm1, %v331_v19 }
 0x15b   : > { %v316_v20 = vpop.permute.xlu1 %315 }
 0x15c   : > { %v318_v21 = vmul.f32 %v316_v20, %v303_v2 }
 0x15e   : > { %v319_v22 = vadd.f32 %v318_v21, %v302_v0 }
 0x160   : > { %320 = vst.msk [vmem:[%s279_s16] sm:$0xff] %vm307_vm0, %v319_v22 }
 0x161   : > { %597 = shalt.err (!%p594_p5)
}
 0x162   : > { %s598_s13 = scalar_lea.hbm %s828_s8, 128  ;;  %s602_s11 = scalar_lea.hbm %s877_s4, 256 }
 0x163   : > { %p599_p8 = scmp.ne.s32.totalorder %s828_s8, %s598_s13  ;;  %p603_p1 = scmp.lt.u32.totalorder %s828_s8, %s877_s4 }
 0x164   : > { %p604_p3 = scmp.lt.u32.totalorder %s602_s11, %s598_s13  ;;  %p606_p6 = scmp.lt.u32.totalorder %s598_s13, %s828_s8 }
 0x165   : > { %p600_p9 = pnand %p599_p8, %p887_p12 }
 0x166   : > { %p605_p11 = por %p604_p3, %p603_p1 }
 0x167   : > { %p601_p0 = pneg %p600_p9 }
 0x168   : > { %p607_p13 = por %p606_p6, %p605_p11 }
 0x16a   : > { %p608_p7 = pnand %p607_p13, %p601_p0 }
 0x16c   : > { %611 = shalt.err (!%p608_p7)
}
 0x16d   : > { %503 = dma.vmem_to_hbm [thread:$0]  (%p887_p12), %s830_s25, 128, %s828_s8, %s335_s14  }
 0x16e PF: > { %s367_s12 = sand.u32 1, %s638_s18   ;;  %p888_p10 = scmp.ne.s32.totalorder %s883_s6, 0 }
 0x16f   : > { %p889_p2 = scmp.ge.s32.totalorder %s650_s21, 2  ;;  %s368_s16 = scalar_lea.sflag [#allocation4], %s367_s12 }
 0x171   : > { %p510_p4 = pnand %p889_p2, %p888_p10 }
 0x173   : > { %633 = dma.done.wait (!%p510_p4), %s368_s16, 128  }
 0x174   : > { %635 = vsyncadd (!%p510_p4), %s368_s16, 4294967168  ;;  %p19_p5 = scmp.ge.s32.totalorder %s710_s24, 4   ;;  %s890_s18 = smov %s642_s19 }
 0x175   : > { %s891_s19 = smov %s646_s20  ;;  %s892_s20 = smov %s722_s27 }
 0x176   : > { %s893_s21 = smov %s710_s24  ;;  %21 = sbr.rel (!%p19_p5) target bundleno = 5 (0x5), region = 102 }
 0x17d   :  { %380 = vsyncpa [#allocation3], 1 }
 0x17e   :  { %382 = vsyncpa [#allocation3 + $0x1], 1 }
 0x17f   :  { %383 = vsyncpa [#allocation4], 1 }
 0x180   :  { %385 = vsyncpa [#allocation4 + $0x1], 1 }

</bundles_post_ra>
